<compile_context>
chip_gen: v7x
topology: tpu7x:2x2x1
jax: 0.10.0
libtpu: 0.0.40
codegen_flags: <defaults>
</compile_context>

<pallas_src>
import functools

import jax
import jax.numpy as jnp
from jax.experimental import pallas as pl
from jax.experimental.pallas import tpu as pltpu

EPS = 1e-5          # torch GroupNorm default eps
NEG_SLOPE = 1e-2    # LeakyReLU(negative_slope=0.01)


def _cdiv(a, b):
    return (a + b - 1) // b


# ----------------------------------------------------------------------------
# GroupNorm + LeakyReLU  (two tiled Pallas kernels)
# ----------------------------------------------------------------------------
def _gn_stats_kernel(x_ref, gmat_ref, gamma_ref, beta_ref, o_ref, acc_ref, *,
                     inv_count, eps):
    """Accumulate per-channel sum/sumsq over spatial tiles; at the last tile
    fold to per-group stats and emit per-channel (scale, shift)."""
    s = pl.program_id(1)

    @pl.when(s == 0)
    def _():
        acc_ref[...] = jnp.zeros_like(acc_ref)

    x = x_ref[...]                                        # (ts, C) f32
    acc_ref[0:1, :] += jnp.sum(x, axis=0, keepdims=True)
    acc_ref[1:2, :] += jnp.sum(x * x, axis=0, keepdims=True)

    @pl.when(s == pl.num_programs(1) - 1)
    def _():
        # group-fold (and broadcast back to channels) via a tiny (C,C) matmul
        gsums = jnp.dot(acc_ref[...], gmat_ref[...],
                        preferred_element_type=jnp.float32)   # (2, C)
        mean = gsums[0:1, :] * inv_count
        ex2 = gsums[1:2, :] * inv_count
        var = jnp.maximum(ex2 - mean * mean, 0.0)
        inv_std = jax.lax.rsqrt(var + eps)
        scale = gamma_ref[...] * inv_std
        shift = beta_ref[...] - mean * scale
        o_ref[0:1, :] = scale
        o_ref[1:2, :] = shift


def _gn_apply_kernel(x_ref, s_ref, o_ref, *, slope):
    """Lane-dense affine + LeakyReLU: y = leaky(x * scale + shift)."""
    x = x_ref[...]                                        # (tr, W*C)
    y = x * s_ref[0:1, :] + s_ref[1:2, :]
    o_ref[...] = jnp.where(y >= 0, y, slope * y).astype(o_ref.dtype)


def group_norm_leaky_relu(x_cl, gamma, beta, num_groups, *,
                          stats_tile=512, apply_tile=128, slope=NEG_SLOPE):
    """GroupNorm(affine, eps=1e-5) + LeakyReLU on a channels-last (N,D,H,W,C)
    tensor.  Spatial axis is tiled in both passes (accumulator over an
    "arbitrary" grid axis for the statistics)."""
    N, D, H, W, C = x_cl.shape
    assert C % num_groups == 0, "num_groups must divide channels"
    cg = C // num_groups
    x_cl = x_cl.astype(jnp.float32)

    # ---- pass 1: per-(sample, group) statistics -> per-channel scale/shift ----
    dhw = D * H * W
    ts = min(stats_tile, _cdiv(dhw, 8) * 8)
    n_s = _cdiv(dhw, ts)
    x_stat = x_cl.reshape(N, dhw, C)
    if n_s * ts != dhw:                   # zero rows do not perturb the sums
        x_stat = jnp.pad(x_stat, ((0, 0), (0, n_s * ts - dhw), (0, 0)))
    gid = jnp.arange(C) // cg
    gmat = (gid[:, None] == gid[None, :]).astype(jnp.float32)        # (C, C)

    stats = pl.pallas_call(
        functools.partial(_gn_stats_kernel,
                          inv_count=1.0 / float(dhw * cg), eps=EPS),
        out_shape=jax.ShapeDtypeStruct((N, 2, C), jnp.float32),
        grid=(N, n_s),
        in_specs=[
            pl.BlockSpec((None, ts, C), lambda n, s: (n, s, 0)),
            pl.BlockSpec((C, C), lambda n, s: (0, 0)),
            pl.BlockSpec((1, C), lambda n, s: (0, 0)),
            pl.BlockSpec((1, C), lambda n, s: (0, 0)),
        ],
        out_specs=pl.BlockSpec((None, 2, C), lambda n, s: (n, 0, 0)),
        scratch_shapes=[pltpu.VMEM((2, C), jnp.float32)],
        compiler_params=pltpu.CompilerParams(
            dimension_semantics=("parallel", "arbitrary")),
    )(x_stat, gmat,
      gamma.reshape(1, C).astype(jnp.float32),
      beta.reshape(1, C).astype(jnp.float32))

    # ---- pass 2: lane-dense (rows, W*C) affine + activation ----
    wc = W * C
    dh = D * H
    tr = min(apply_tile, _cdiv(dh, 8) * 8)
    n_r = _cdiv(dh, tr)
    x_app = x_cl.reshape(N, dh, wc)
    if n_r * tr != dh:
        x_app = jnp.pad(x_app, ((0, 0), (0, n_r * tr - dh), (0, 0)))
    stats_wc = jnp.tile(stats, (1, 1, W))                 # (N, 2, W*C)

    y = pl.pallas_call(
        functools.partial(_gn_apply_kernel, slope=slope),
        out_shape=jax.ShapeDtypeStruct((N, n_r * tr, wc), jnp.float32),
        grid=(N, n_r),
        in_specs=[
            pl.BlockSpec((None, tr, wc), lambda n, r: (n, r, 0)),
            pl.BlockSpec((None, 2, wc), lambda n, r: (n, 0, 0)),
        ],
        out_specs=pl.BlockSpec((None, tr, wc), lambda n, r: (n, r, 0)),
        compiler_params=pltpu.CompilerParams(
            dimension_semantics=("parallel", "parallel")),
    )(x_app, stats_wc)
    if n_r * tr != dh:
        y = y[:, :dh, :]
    return y.reshape(N, D, H, W, C)


# ----------------------------------------------------------------------------
# Conv3d (k=3, s=1, p=1) as tap-accumulated shifted-window GEMMs
# ----------------------------------------------------------------------------
def _conv3d_kernel(x_ref, w_ref, b_ref, *rest, W2, Pout, has_residual):
    if has_residual:
        r_ref, o_ref, acc_ref = rest
    else:
        o_ref, acc_ref = rest
        r_ref = None
    kd = pl.program_id(2)

    @pl.when(kd == 0)
    def _():
        acc_ref[...] = jnp.zeros_like(acc_ref)

    # 9 (kh, kw) taps over one padded, (H,W)-flattened plane resident in VMEM.
    part = None
    for j in range(9):
        kh, kw = j // 3, j % 3
        shift = kh * W2 + kw                               # static row shift
        xs = x_ref[shift:shift + Pout, :].astype(jnp.bfloat16)
        d = jnp.dot(xs, w_ref[j], preferred_element_type=jnp.float32)
        part = d if part is None else part + d
    acc_ref[...] += part

    @pl.when(kd == pl.num_programs(2) - 1)
    def _():
        out = acc_ref[...] + b_ref[...]
        if has_residual:
            out = out + r_ref[...]
        o_ref[...] = out.astype(o_ref.dtype)


def conv3d_3x3x3(x_cl, w_oidhw, bias, residual=None):
    """Conv3d, kernel 3, stride 1, padding 1, channels-last (N,D,H,W,Cin).
    w_oidhw: (Cout, Cin, 3, 3, 3) torch layout.  Optional fused residual add
    (residual is channels-last with Cout channels)."""
    N, D, H, W, Cin = x_cl.shape
    Cout = w_oidhw.shape[0]
    assert w_oidhw.shape[1] == Cin
    W2 = W + 2
    Pout = H * W2                      # output rows per (n, d) plane (2 garbage cols/row)
    R = (H + 3) * W2                   # padded plane rows (+1 extra row for tap overrun)

    # zero-pad D/H/W by 1 (plus one extra trailing H row), flatten (H, W) -> rows
    xp = jnp.pad(x_cl.astype(jnp.float32),
                 ((0, 0), (1, 1), (1, 2), (1, 1), (0, 0)))
    xp = xp.reshape(N, D + 2, R, Cin)

    # taps laid out as (kd, kh*3+kw, Cin, Cout); bf16 for the MXU, f32 accumulate.
    w_taps = jnp.transpose(w_oidhw, (2, 3, 4, 1, 0)).reshape(3, 9, Cin, Cout)
    w_taps = w_taps.astype(jnp.bfloat16)
    b2 = bias.reshape(1, Cout).astype(jnp.float32)

    inputs = [xp, w_taps, b2]
    in_specs = [
        pl.BlockSpec((None, None, R, Cin), lambda n, d, kd: (n, d + kd, 0, 0)),
        pl.BlockSpec((None, 9, Cin, Cout), lambda n, d, kd: (kd, 0, 0, 0)),
        pl.BlockSpec((1, Cout), lambda n, d, kd: (0, 0)),
    ]
    if residual is not None:
        assert residual.shape == (N, D, H, W, Cout)
        res = jnp.pad(residual.astype(jnp.float32),
                      ((0, 0), (0, 0), (0, 0), (0, 2), (0, 0)))
        res = res.reshape(N, D, Pout, Cout)
        inputs.append(res)
        in_specs.append(
            pl.BlockSpec((None, None, Pout, Cout), lambda n, d, kd: (n, d, 0, 0)))

    out = pl.pallas_call(
        functools.partial(_conv3d_kernel, W2=W2, Pout=Pout,
                          has_residual=residual is not None),
        out_shape=jax.ShapeDtypeStruct((N, D, Pout, Cout), jnp.float32),
        grid=(N, D, 3),
        in_specs=in_specs,
        out_specs=pl.BlockSpec((None, None, Pout, Cout),
                               lambda n, d, kd: (n, d, 0, 0)),
        scratch_shapes=[pltpu.VMEM((Pout, Cout), jnp.float32)],
        compiler_params=pltpu.CompilerParams(
            dimension_semantics=("parallel", "parallel", "arbitrary")),
    )(*inputs)
    return out.reshape(N, D, H, W2, Cout)[:, :, :, :W, :]


# ----------------------------------------------------------------------------
# DecoderBlock forward (GroupNorm + LeakyReLU defaults, inChans == outChans)
# ----------------------------------------------------------------------------
def decoder_block_forward(x_ncdhw, params, *, num_groups=8):
    x_cl = jnp.transpose(x_ncdhw, (0, 2, 3, 4, 1)).astype(jnp.float32)
    residual = x_cl
    out = group_norm_leaky_relu(x_cl, params["gamma1"], params["beta1"], num_groups)
    out = conv3d_3x3x3(out, params["conv1_w"], params["conv1_b"])
    out = group_norm_leaky_relu(out, params["gamma2"], params["beta2"], num_groups)
    out = conv3d_3x3x3(out, params["conv2_w"], params["conv2_b"], residual=residual)
    return jnp.transpose(out, (0, 4, 1, 2, 3))


# ----------------------------------------------------------------------------
# Pure-JAX reference (bf16 conv inputs, f32 accumulation — same rounding)
# ----------------------------------------------------------------------------
def _leaky(x):
    return jnp.where(x >= 0, x, NEG_SLOPE * x)


def _group_norm_ref(x_cl, gamma, beta, num_groups):
    N, D, H, W, C = x_cl.shape
    cg = C // num_groups
    xg = x_cl.reshape(N, D, H, W, num_groups, cg)
    mean = jnp.mean(xg, axis=(1, 2, 3, 5), keepdims=True)
    var = jnp.mean((xg - mean) ** 2, axis=(1, 2, 3, 5), keepdims=True)
    xn = ((xg - mean) / jnp.sqrt(var + EPS)).reshape(N, D, H, W, C)
    return xn * gamma + beta


def _conv3d_ref(x_cl, w_oidhw, bias):
    wt = jnp.transpose(w_oidhw, (2, 3, 4, 1, 0)).astype(jnp.bfloat16)
    y = jax.lax.conv_general_dilated(
        x_cl.astype(jnp.bfloat16), wt, window_strides=(1, 1, 1),
        padding=[(1, 1)] * 3,
        dimension_numbers=("NDHWC", "DHWIO", "NDHWC"),
        preferred_element_type=jnp.float32)
    return y + bias


def decoder_block_reference(x_ncdhw, params, *, num_groups=8):
    x_cl = jnp.transpose(x_ncdhw, (0, 2, 3, 4, 1)).astype(jnp.float32)
    residual = x_cl
    out = _leaky(_group_norm_ref(x_cl, params["gamma1"], params["beta1"], num_groups))
    out = _conv3d_ref(out, params["conv1_w"], params["conv1_b"])
    out = _leaky(_group_norm_ref(out, params["gamma2"], params["beta2"], num_groups))
    out = _conv3d_ref(out, params["conv2_w"], params["conv2_b"]) + residual
    return jnp.transpose(out, (0, 4, 1, 2, 3))


# ----------------------------------------------------------------------------
# Deterministic parameter init (shapes follow the module's __init__)
# ----------------------------------------------------------------------------
def init_params(key, channels):
    ks = jax.random.split(key, 8)
    std = (2.0 / (channels * 27)) ** 0.5
    return {
        "gamma1": 1.0 + 0.1 * jax.random.normal(ks[0], (channels,), jnp.float32),
        "beta1": 0.1 * jax.random.normal(ks[1], (channels,), jnp.float32),
        "conv1_w": std * jax.random.normal(ks[2], (channels, channels, 3, 3, 3), jnp.float32),
        "conv1_b": 0.05 * jax.random.normal(ks[3], (channels,), jnp.float32),
        "gamma2": 1.0 + 0.1 * jax.random.normal(ks[4], (channels,), jnp.float32),
        "beta2": 0.1 * jax.random.normal(ks[5], (channels,), jnp.float32),
        "conv2_w": std * jax.random.normal(ks[6], (channels, channels, 3, 3, 3), jnp.float32),
        "conv2_b": 0.05 * jax.random.normal(ks[7], (channels,), jnp.float32),
    }


# ----------------------------------------------------------------------------
# Main
# ----------------------------------------------------------------------------
if __name__ == "__main__":
    key = jax.random.PRNGKey(0)

    # ---- per-kernel sanity checks at a small size ----
    k1, k2, k3, k4, k5 = jax.random.split(key, 5)
    h_test = jax.random.normal(k1, (2, 8, 8, 8, 16), jnp.float32)
    g_test = 1.0 + 0.1 * jax.random.normal(k2, (16,), jnp.float32)
    b_test = 0.1 * jax.random.normal(k3, (16,), jnp.float32)
    got_gn = group_norm_leaky_relu(h_test, g_test, b_test, num_groups=8)
    want_gn = _leaky(_group_norm_ref(h_test, g_test, b_test, 8))
    assert bool(jnp.allclose(got_gn, want_gn, rtol=1e-4, atol=1e-4)), \
        "groupnorm+leaky kernel mismatch"

    w_test = 0.1 * jax.random.normal(k4, (16, 16, 3, 3, 3), jnp.float32)
    bc_test = 0.05 * jax.random.normal(k5, (16,), jnp.float32)
    got_cv = conv3d_3x3x3(h_test, w_test, bc_test)
    want_cv = _conv3d_ref(h_test, w_test, bc_test)
    assert bool(jnp.allclose(got_cv, want_cv, rtol=1e-2, atol=1e-2)), \
        "conv3d kernel mismatch"

    # ---- full DecoderBlock forward (inChans == outChans, as the module requires) ----
    N, C, D, H, W = 2, 32, 16, 16, 16
    num_groups = 8
    kx, kp = jax.random.split(jax.random.PRNGKey(0))
    x = jax.random.normal(kx, (N, C, D, H, W), jnp.float32)
    params = init_params(kp, C)

    fwd = jax.jit(functools.partial(decoder_block_forward, num_groups=num_groups))
    out = jax.block_until_ready(fwd(x, params))

    assert out.shape == (N, C, D, H, W), out.shape
    assert bool(jnp.all(jnp.isfinite(out))), "non-finite output"
    ref = decoder_block_reference(x, params, num_groups=num_groups)
    assert bool(jnp.allclose(out, ref, rtol=1e-2, atol=1e-2)), \
        "decoder block mismatch vs reference"

    print("KERNEL_OK")
</pallas_src>

<mosaic_0001>
module attributes {stable_mosaic.version = 11 : i64} {
  func.func @_gn_stats_kernel(%arg0: i32, %arg1: i32, %arg2: memref<1x512x16xf32, #tpu.memory_space<vmem>>, %arg3: memref<16x16xf32, #tpu.memory_space<vmem>>, %arg4: memref<1x16xf32, #tpu.memory_space<vmem>>, %arg5: memref<1x16xf32, #tpu.memory_space<vmem>>, %arg6: memref<1x2x16xf32, #tpu.memory_space<vmem>>, %arg7: memref<2x16xf32, #tpu.memory_space<vmem>>) attributes {dimension_semantics = [#tpu.dimension_semantics<parallel>, #tpu.dimension_semantics<arbitrary>], iteration_bounds = array<i64: 2, 1>, scalar_prefetch = 0 : i64, scratch_operands = 1 : i64, tpu.core_type = #tpu.core_type<tc>, window_params = [{transform_indices = @transform_0, window_bounds = array<i64: 1, 512, 16>}, {pipeline_mode = #tpu.pipeline_mode<synchronous>, transform_indices = @transform_1, window_bounds = array<i64: 16, 16>}, {pipeline_mode = #tpu.pipeline_mode<synchronous>, transform_indices = @transform_2, window_bounds = array<i64: 1, 16>}, {pipeline_mode = #tpu.pipeline_mode<synchronous>, transform_indices = @transform_3, window_bounds = array<i64: 1, 16>}, {transform_indices = @transform_4, window_bounds = array<i64: 1, 2, 16>}]} {
    %c0_i32 = arith.constant 0 : i32
    %0 = arith.cmpi eq, %arg1, %c0_i32 : i32
    %1 = arith.extui %0 : i1 to i32
    %c0_i32_0 = arith.constant 0 : i32
    %2 = arith.cmpi ne, %1, %c0_i32_0 : i32
    scf.if %2 {
      %cst_13 = arith.constant 0.000000e+00 : f32
      %19 = vector.broadcast %cst_13 : f32 to vector<2x16xf32>
      %c0_14 = arith.constant 0 : index
      %c0_15 = arith.constant 0 : index
      %20 = vector.load %arg7[%c0_14, %c0_15] : memref<2x16xf32, #tpu.memory_space<vmem>>, vector<2x16xf32>
      tpu.vector_store %arg7[%c0_14, %c0_15], %19 {strides = array<i32>} : memref<2x16xf32, #tpu.memory_space<vmem>>, vector<2x16xf32>,
    } else {
    }
    %c0 = arith.constant 0 : index
    %c0_1 = arith.constant 0 : index
    %c0_2 = arith.constant 0 : index
    %3 = vector.load %arg2[%c0, %c0_1, %c0_2] : memref<1x512x16xf32, #tpu.memory_space<vmem>>, vector<1x512x16xf32>
    %4 = vector.shape_cast %3 : vector<1x512x16xf32> to vector<512x16xf32>
    %c0_3 = arith.constant 0 : index
    %c0_4 = arith.constant 0 : index
    %5 = vector.load %arg7[%c0_3, %c0_4] : memref<2x16xf32, #tpu.memory_space<vmem>>, vector<1x16xf32>
    %cst = arith.constant dense<0.000000e+00> : vector<16xf32>
    %6 = vector.multi_reduction <add>, %4, %cst [0] : vector<512x16xf32> to vector<16xf32>
    %7 = vector.shape_cast %6 : vector<16xf32> to vector<1x16xf32>
    %8 = arith.addf %5, %7 : vector<1x16xf32>
    %c0_5 = arith.constant 0 : index
    %c0_6 = arith.constant 0 : index
    %9 = vector.load %arg7[%c0_5, %c0_6] : memref<2x16xf32, #tpu.memory_space<vmem>>, vector<1x16xf32>
    tpu.vector_store %arg7[%c0_5, %c0_6], %8 {strides = array<i32>} : memref<2x16xf32, #tpu.memory_space<vmem>>, vector<1x16xf32>,
    %c1 = arith.constant 1 : index
    %c0_7 = arith.constant 0 : index
    %10 = vector.load %arg7[%c1, %c0_7] : memref<2x16xf32, #tpu.memory_space<vmem>>, vector<1x16xf32>
    %11 = arith.mulf %4, %4 : vector<512x16xf32>
    %cst_8 = arith.constant dense<0.000000e+00> : vector<16xf32>
    %12 = vector.multi_reduction <add>, %11, %cst_8 [0] : vector<512x16xf32> to vector<16xf32>
    %13 = vector.shape_cast %12 : vector<16xf32> to vector<1x16xf32>
    %14 = arith.addf %10, %13 : vector<1x16xf32>
    %c1_9 = arith.constant 1 : index
    %c0_10 = arith.constant 0 : index
    %15 = vector.load %arg7[%c1_9, %c0_10] : memref<2x16xf32, #tpu.memory_space<vmem>>, vector<1x16xf32>
    tpu.vector_store %arg7[%c1_9, %c0_10], %14 {strides = array<i32>} : memref<2x16xf32, #tpu.memory_space<vmem>>, vector<1x16xf32>,
    %c0_i32_11 = arith.constant 0 : i32
    %16 = arith.cmpi eq, %arg1, %c0_i32_11 : i32
    %17 = arith.extui %16 : i1 to i32
    %c0_i32_12 = arith.constant 0 : i32
    %18 = arith.cmpi ne, %17, %c0_i32_12 : i32
    scf.if %18 {
      %c0_13 = arith.constant 0 : index
      %c0_14 = arith.constant 0 : index
      %19 = vector.load %arg7[%c0_13, %c0_14] : memref<2x16xf32, #tpu.memory_space<vmem>>, vector<2x16xf32>
      %c0_15 = arith.constant 0 : index
      %c0_16 = arith.constant 0 : index
      %20 = vector.load %arg3[%c0_15, %c0_16] : memref<16x16xf32, #tpu.memory_space<vmem>>, vector<16x16xf32>
      %cst_17 = arith.constant dense<0.000000e+00> : vector<2x16xf32>
      %21 = tpu.matmul %19, %20, %cst_17 {dimension_numbers = #tpu.dot_dimension_numbers<[1], [0], [0], [1], [0, 0, 1, 1], [], []>} : vector<2x16xf32>, vector<16x16xf32>, vector<2x16xf32> -> vector<2x16xf32>
      %22 = vector.extract_strided_slice %21 {offsets = [0, 0], sizes = [1, 16], strides = [1, 1]} : vector<2x16xf32> to vector<1x16xf32>
      %cst_18 = arith.constant 9.765625E-4 : f32
      %23 = vector.broadcast %cst_18 : f32 to vector<1x16xf32>
      %24 = arith.mulf %22, %23 : vector<1x16xf32>
      %25 = vector.extract_strided_slice %21 {offsets = [1, 0], sizes = [1, 16], strides = [1, 1]} : vector<2x16xf32> to vector<1x16xf32>
      %cst_19 = arith.constant 9.765625E-4 : f32
      %26 = vector.broadcast %cst_19 : f32 to vector<1x16xf32>
      %27 = arith.mulf %25, %26 : vector<1x16xf32>
      %28 = arith.mulf %24, %24 : vector<1x16xf32>
      %29 = arith.subf %27, %28 : vector<1x16xf32>
      %cst_20 = arith.constant 0.000000e+00 : f32
      %30 = vector.broadcast %cst_20 : f32 to vector<1x16xf32>
      %31 = arith.maximumf %29, %30 : vector<1x16xf32>
      %cst_21 = arith.constant 9.99999974E-6 : f32
      %32 = vector.broadcast %cst_21 : f32 to vector<1x16xf32>
      %33 = arith.addf %31, %32 : vector<1x16xf32>
      %34 = math.rsqrt %33 : vector<1x16xf32>
      %c0_22 = arith.constant 0 : index
      %c0_23 = arith.constant 0 : index
      %35 = vector.load %arg4[%c0_22, %c0_23] : memref<1x16xf32, #tpu.memory_space<vmem>>, vector<1x16xf32>
      %36 = arith.mulf %35, %34 : vector<1x16xf32>
      %c0_24 = arith.constant 0 : index
      %c0_25 = arith.constant 0 : index
      %37 = vector.load %arg5[%c0_24, %c0_25] : memref<1x16xf32, #tpu.memory_space<vmem>>, vector<1x16xf32>
      %38 = arith.mulf %24, %36 : vector<1x16xf32>
      %39 = arith.subf %37, %38 : vector<1x16xf32>
      %c0_26 = arith.constant 0 : index
      %c0_27 = arith.constant 0 : index
      %c0_28 = arith.constant 0 : index
      %40 = vector.load %arg6[%c0_26, %c0_27, %c0_28] : memref<1x2x16xf32, #tpu.memory_space<vmem>>, vector<1x1x16xf32>
      %41 = vector.shape_cast %40 : vector<1x1x16xf32> to vector<1x16xf32>
      %42 = vector.shape_cast %36 : vector<1x16xf32> to vector<1x1x16xf32>
      tpu.vector_store %arg6[%c0_26, %c0_27, %c0_28], %42 {strides = array<i32>} : memref<1x2x16xf32, #tpu.memory_space<vmem>>, vector<1x1x16xf32>,
      %c0_29 = arith.constant 0 : index
      %c1_30 = arith.constant 1 : index
      %c0_31 = arith.constant 0 : index
      %43 = vector.load %arg6[%c0_29, %c1_30, %c0_31] : memref<1x2x16xf32, #tpu.memory_space<vmem>>, vector<1x1x16xf32>
      %44 = vector.shape_cast %43 : vector<1x1x16xf32> to vector<1x16xf32>
      %45 = vector.shape_cast %39 : vector<1x16xf32> to vector<1x1x16xf32>
      tpu.vector_store %arg6[%c0_29, %c1_30, %c0_31], %45 {strides = array<i32>} : memref<1x2x16xf32, #tpu.memory_space<vmem>>, vector<1x1x16xf32>,
    } else {
    }
    return
  }
  func.func @transform_0(%arg0: i32, %arg1: i32) -> (i32, i32, i32) {
    %c0_i32 = arith.constant 0 : i32
    %c0_i32_0 = arith.constant 0 : i32
    return %arg0, %arg1, %c0_i32 : i32, i32, i32
  }
  func.func @transform_1(%arg0: i32, %arg1: i32) -> (i32, i32) {
    %c0_i32 = arith.constant 0 : i32
    %c0_i32_0 = arith.constant 0 : i32
    %c0_i32_1 = arith.constant 0 : i32
    return %c0_i32, %c0_i32_0 : i32, i32
  }
  func.func @transform_2(%arg0: i32, %arg1: i32) -> (i32, i32) {
    %c0_i32 = arith.constant 0 : i32
    %c0_i32_0 = arith.constant 0 : i32
    %c0_i32_1 = arith.constant 0 : i32
    return %c0_i32, %c0_i32_0 : i32, i32
  }
  func.func @transform_3(%arg0: i32, %arg1: i32) -> (i32, i32) {
    %c0_i32 = arith.constant 0 : i32
    %c0_i32_0 = arith.constant 0 : i32
    %c0_i32_1 = arith.constant 0 : i32
    return %c0_i32, %c0_i32_0 : i32, i32
  }
  func.func @transform_4(%arg0: i32, %arg1: i32) -> (i32, i32, i32) {
    %c0_i32 = arith.constant 0 : i32
    %c0_i32_0 = arith.constant 0 : i32
    %c0_i32_1 = arith.constant 0 : i32
    return %arg0, %c0_i32, %c0_i32_0 : i32, i32, i32
  }
}

</mosaic_0001>

<bundles_post_ra>
// kernel: tpu_custom_call.1
= control target key start
LH: loop header
LB: loop body
LE: loop exit
PB: predicated region body
PF: predicated region fallthrough
CT: control target
= control target key end

     0   :  { %9 = vsyncpa [#allocation4], 0  ;;  %s1644_s0 = inlined_call_operand.vmem [shape: f32[2,512,16], index: 0, kind: input, shape index: {}]   ;;  %s1645_s1 = inlined_call_operand.vmem [shape: f32[16,16], index: 1, kind: input, shape index: {}]   ;;  %s1646_s2 = inlined_call_operand.vmem [shape: f32[1,16], index: 2, kind: input, shape index: {}]   ;;  %s1647_s3 = inlined_call_operand.vmem [shape: f32[1,16], index: 3, kind: input, shape index: {}]   ;;  %s1648_s4 = inlined_call_operand.hbm [shape: f32[2,2,16], index: 4, kind: output, shape index: {}]  }
   0x1   :  { %11 = vsyncpa [#allocation4 + $0x1], 0  ;;  %s1029_s15 = smov 0   ;;  %s1031_s16 = smov 0  }
   0x2   :  { %s1033_s17 = smov 0   ;;  %s1035_s18 = smov 0  }
   0x3   :  { %s1037_s19 = smov 0   ;;  %s1039_s20 = smov 0  }
   0x4 LB: > { %s831_s21 = sadd.s32 4294967295, %s997_s20   ;;  %s832_s22 = sadd.s32 4294967294, %s997_s20   ;;  %s997_s20 = sphi %s1039_s20, %s17_s20   ;;  %s993_s19 = sphi %s1037_s19, %s1655_s19   ;;  %s989_s18 = sphi %s1035_s18, %s1654_s18   ;;  %s985_s17 = sphi %s1033_s17, %s1653_s17   ;;  %s981_s16 = sphi %s1031_s16, %s1652_s16   ;;  %s977_s15 = sphi %s1029_s15, %s1651_s15  }
   0x5   : > { %s29_s23 = sadd.s32 1, %s993_s19  ;;  %s127_s24 = sadd.s32 1, %s985_s17 }
   0x6   : > { %p31_p0 = scmp.ge.s32.totalorder %s29_s23, 2  ;;  %p137_p1 = scmp.ne.s32.totalorder %s985_s17, %s981_s16 }
   0x7   : > { %p138_p2 = scmp.eq.s32.totalorder %s831_s21, 1  ;;  %p143_p3 = scmp.ne.s32.totalorder %s981_s16, %s977_s15 }
   0x8   : > { %s1657_s23 = smov (%p31_p0, %s29_s23), 0  ;;  %p144_p5 = scmp.eq.s32.totalorder %s832_s22, 1 }
   0x9   : > { %p1069_p4 = por %p138_p2, %p137_p1  ;;  %s124_s26 = ssub.s32 %s993_s19, %s1657_s23 }
   0xa   : > { %p835_p6 = scmp.ge.s32.totalorder %s997_s20, 1  ;;  %p125_p7 = scmp.eq.s32.totalorder %s124_s26, 0 }
   0xb   : > { %p1076_p8 = por %p144_p5, %p143_p3  ;;  %p184_p9 = scmp.lt.s32.totalorder %s997_s20, 3 }
   0xc   : > { %s1082_s28 = scalar_select %p125_p7, %s985_s17, %s127_s24  }
   0xd   : > { %p185_p10 = pnand %p835_p6, %p184_p9 }
   0xe   : > { %p215_p11 = scmp.lt.s32.totalorder (!%p185_p10), %s989_s18, 1  ;;  %vm228_vm0 = vcmask (!%p185_p10), 123904   ;;  %v999_v0 = vmov (!%p185_p10), 0.0   ;;  %vm295_vm1 = vcmask (!%p185_p10), 130048   ;;  %vm1001_vm2 = vmmov (!%p185_p10), 0   ;;  %s211_s12 = sand.u32 (!%p185_p10), 1, %s981_s16  }
   0xf   : > { %188 = sbr.rel (%p185_p10) target bundleno = 461 (0x1cd), region = 36  ;;  %229 = vst.msk [vmem:[#allocation2] sm:$0x3] (!%p185_p10), %vm228_vm0, %v999_v0  ;;  %852 = vmatprep.mubr.msk.f32.mxu0 (!%p185_p10), %vm1001_vm2, %v999_v0  ;;  %vm430_vm3 = vcmask (!%p185_p10), 122880   ;;  %s836_s13 = sshll.u32 (!%p185_p10), %s211_s12, 1 }
  0x10   : > { %s841_s26 = sshll.u32 (!%p185_p10), %s989_s18, 5  ;;  %s745_s8 = scalar_lea.sflag (!%p185_p10), [#allocation4], %s211_s12 }
  0x11   : > { %s1003_s9 = smov (!%p185_p10), [#allocation3]  }
  0x12   : > { %s923_s10 = sshll.u32 (!%p185_p10), %s1003_s9, 4  ;;  %s924_s10 = int_to_ptr.vmem [resolvable:$false] %s923_s10 }
  0x13   : > { %s925_s11 = scalar_lea.vmem (!%p185_p10), %s924_s10, 64 }
  0x16   : > { %s216_s29 = scalar_select %p215_p11, %s989_s18, 1 }
  0x18   : > { %s844_s30 = sshll.u32 %s216_s29, 9  ;;  %s213_s29 = scalar_lea.vmem [#allocation3], %s836_s13 }
  0x19   : > { %s1090_s7 = scalar_lea.vmem %s1644_s0, %s844_s30  ;;  %s758_s30 = sshll.u32 %s213_s29, 4  ;;  %s1598_s30 = int_to_ptr.vmem [resolvable:$true] %s758_s30 }
  0x1a   : > { %v230_v1 = vld [vmem:[%s1090_s7] sm:$0xff]  ;;  %v231_v2 = vld [vmem:[%s1090_s7 + $0x8] sm:$0xff]  ;;  %v232_v3 = vld [vmem:[%s1090_s7 + $0x10] sm:$0xff]  ;;  %s919_s18 = scalar_lea.vmem %s1598_s30, 32  ;;  %p926_p1 = scmp.lt.s32.totalorder %s1598_s30, %s924_s10 }
  0x1b   : > { %v296_v4 = vsel %vm295_vm1, %v230_v1, 0.0  ;;  %v297_v5 = vsel %vm295_vm1, %v231_v2, 0.0  ;;  %v299_v6 = vsel %vm295_vm1, %v232_v3, 0.0  ;;  %v233_v7 = vld [vmem:[%s1090_s7 + $0x18] sm:$0xff]  ;;  %v234_v10 = vld [vmem:[%s1090_s7 + $0x20] sm:$0xff]  ;;  %v235_v13 = vld [vmem:[%s1090_s7 + $0x28] sm:$0xff]  ;;  %v433_v55 = vmul.f32 %v230_v1, %v230_v1  ;;  %p920_p12 = scmp.ne.s32.totalorder %s1598_s30, %s919_s18  ;;  %p927_p2 = scmp.lt.s32.totalorder %s925_s11, %s919_s18 }
  0x1c   : > { %v298_v8 = vadd.f32 %v297_v5, %v296_v4  ;;  %v301_v9 = vsel %vm295_vm1, %v233_v7, 0.0  ;;  %v303_v12 = vsel %vm295_vm1, %v234_v10, 0.0  ;;  %v305_v15 = vsel %vm295_vm1, %v235_v13, 0.0  ;;  %v1105_v16 = vld [vmem:[%s1090_s7 + $0x30] sm:$0xff]  ;;  %v1110_v19 = vld [vmem:[%s1090_s7 + $0x38] sm:$0xff]  ;;  %v1115_v22 = vld [vmem:[%s1090_s7 + $0x40] sm:$0xff] }
  0x1d   : > { %v307_v18 = vsel %vm295_vm1, %v1105_v16, 0.0  ;;  %v309_v21 = vsel %vm295_vm1, %v1110_v19, 0.0  ;;  %v311_v24 = vsel %vm295_vm1, %v1115_v22, 0.0  ;;  %v1120_v25 = vld [vmem:[%s1090_s7 + $0x48] sm:$0xff]  ;;  %v1125_v28 = vld [vmem:[%s1090_s7 + $0x50] sm:$0xff]  ;;  %v1130_v31 = vld [vmem:[%s1090_s7 + $0x58] sm:$0xff]  ;;  %v434_v58 = vmul.f32 %v231_v2, %v231_v2  ;;  %p921_p13 = pnand %p920_p12, %p1069_p4  ;;  %p928_p3 = por %p927_p2, %p926_p1 }
  0x1e   : > { %v300_v11 = vadd.f32 %v299_v6, %v298_v8  ;;  %v313_v27 = vsel %vm295_vm1, %v1120_v25, 0.0  ;;  %v315_v30 = vsel %vm295_vm1, %v1125_v28, 0.0  ;;  %v317_v33 = vsel %vm295_vm1, %v1130_v31, 0.0  ;;  %v1135_v34 = vld [vmem:[%s1090_s7 + $0x60] sm:$0xff]  ;;  %v1140_v37 = vld [vmem:[%s1090_s7 + $0x68] sm:$0xff]  ;;  %v1145_v40 = vld [vmem:[%s1090_s7 + $0x70] sm:$0xff] }
  0x1f   : > { %v319_v36 = vsel %vm295_vm1, %v1135_v34, 0.0  ;;  %v321_v39 = vsel %vm295_vm1, %v1140_v37, 0.0  ;;  %v323_v42 = vsel %vm295_vm1, %v1145_v40, 0.0  ;;  %v1150_v43 = vld [vmem:[%s1090_s7 + $0x78] sm:$0xff]  ;;  %v1155_v46 = vld [vmem:[%s1090_s7 + $0x80] sm:$0xff]  ;;  %v1160_v49 = vld [vmem:[%s1090_s7 + $0x88] sm:$0xff]  ;;  %v435_v59 = vmul.f32 %v232_v3, %v232_v3  ;;  %p922_p0 = pneg %p921_p13 }
  0x20   : > { %v302_v14 = vadd.f32 %v301_v9, %v300_v11  ;;  %v325_v45 = vsel %vm295_vm1, %v1150_v43, 0.0  ;;  %v327_v48 = vsel %vm295_vm1, %v1155_v46, 0.0  ;;  %v329_v51 = vsel %vm295_vm1, %v1160_v49, 0.0  ;;  %v1165_v52 = vld [vmem:[%s1090_s7 + $0x90] sm:$0xff]  ;;  %v1170_v56 = vld [vmem:[%s1090_s7 + $0x98] sm:$0xff]  ;;  %v1175_v61 = vld [vmem:[%s1090_s7 + $0xa0] sm:$0xff] }
  0x21   : > { %v331_v54 = vsel %vm295_vm1, %v1165_v52, 0.0  ;;  %v333_v60 = vsel %vm295_vm1, %v1170_v56, 0.0  ;;  %v436_v63 = vmul.f32 %v233_v7, %v233_v7  ;;  %v335_v4 = vsel %vm295_vm1, %v1175_v61, 0.0  ;;  %v1181_v1 = vld [vmem:[%s1090_s7 + $0xa8] sm:$0xff]  ;;  %v1188_v7 = vld [vmem:[%s1090_s7 + $0xb0] sm:$0xff]  ;;  %p929_p5 = pnand %p928_p3, %p922_p0 }
  0x22   : > { %v304_v17 = vadd.f32 %v303_v12, %v302_v14  ;;  %v497_v5 = vsel %vm295_vm1, %v433_v55, 0.0  ;;  %v437_v8 = vmul.f32 %v234_v10, %v234_v10  ;;  %v498_v2 = vsel %vm295_vm1, %v434_v58, 0.0  ;;  %v1234_v55 = vld [vmem:[%s1090_s7 + $0xe0] sm:$0xff]  ;;  %v1289_v0 = vld [vmem:[%s1090_s7 + $0x110] sm:$0xff] }
  0x23   : > { %v500_v3 = vsel %vm295_vm1, %v435_v59, 0.0  ;;  %v337_v9 = vsel %vm295_vm1, %v1181_v1, 0.0  ;;  %v499_v11 = vadd.f32 %v498_v2, %v497_v5  ;;  %v438_v14 = vmul.f32 %v235_v13, %v235_v13 }
  0x24   : > { %v306_v20 = vadd.f32 %v305_v15, %v304_v17  ;;  %v502_v15 = vsel %vm295_vm1, %v436_v63, 0.0  ;;  %v339_v17 = vsel %vm295_vm1, %v1188_v7, 0.0  ;;  %v444_v58 = vmul.f32 %v1130_v31, %v1130_v31  ;;  %v1250_v31 = vld [vmem:[%s1090_s7 + $0xf0] sm:$0xff] }
  0x25   : > { %v501_v10 = vadd.f32 %v500_v3, %v499_v11  ;;  %v446_v3 = vmul.f32 %v1140_v37, %v1140_v37  ;;  %v636_v11 = vld [vmem:[%s1645_s1] sm:$0xff] }
  0x26   : > { %v308_v23 = vadd.f32 %v307_v18, %v306_v20  ;;  %v1194_v18 = vld [vmem:[%s1090_s7 + $0xb8] sm:$0xff] }
  0x27   : > { %v503_v13 = vadd.f32 %v502_v15, %v501_v10  ;;  %v447_v10 = vmul.f32 %v1145_v40, %v1145_v40 }
  0x28   : > { %v310_v26 = vadd.f32 %v309_v21, %v308_v23  ;;  %v439_v21 = vmul.f32 %v1105_v16, %v1105_v16  ;;  %v504_v23 = vsel %vm295_vm1, %v437_v8, 0.0 }
  0x29   : > { %v505_v16 = vadd.f32 %v504_v23, %v503_v13 }
  0x2a   : > { %v312_v29 = vadd.f32 %v311_v24, %v310_v26  ;;  %v341_v24 = vsel %vm295_vm1, %v1194_v18, 0.0  ;;  %v1202_v26 = vld [vmem:[%s1090_s7 + $0xc0] sm:$0xff] }
  0x2c   : > { %v314_v32 = vadd.f32 %v313_v27, %v312_v29  ;;  %v440_v29 = vmul.f32 %v1110_v19, %v1110_v19 }
  0x2e   : > { %v316_v35 = vadd.f32 %v315_v30, %v314_v32  ;;  %v506_v30 = vsel %vm295_vm1, %v438_v14, 0.0  ;;  %v343_v32 = vsel %vm295_vm1, %v1202_v26, 0.0  ;;  %v355_v14 = vsel %vm295_vm1, %v1250_v31, 0.0 }
  0x2f   : > { %v507_v19 = vadd.f32 %v506_v30, %v505_v16  ;;  %v1000_v30 = vmov 0.0|0.0   ;;  %v1281_v16 = vld [vmem:[%s1090_s7 + $0x108] sm:$0xff] }
  0x30   : > { %v318_v38 = vadd.f32 %v317_v33, %v316_v35  ;;  %v1210_v33 = vld [vmem:[%s1090_s7 + $0xc8] sm:$0xff]  ;;  %855 = vmatprep.subr.bf16.mxu0 %v1000_v30 }
  0x32   : > { %v320_v41 = vadd.f32 %v319_v36, %v318_v38  ;;  %v441_v36 = vmul.f32 %v1115_v22, %v1115_v22  ;;  %v508_v38 = vsel %vm295_vm1, %v439_v21, 0.0 }
  0x33   : > { %v509_v22 = vadd.f32 %v508_v38, %v507_v19  ;;  %v361_v38 = vsel %vm295_vm1, %v1281_v16, 0.0 }
  0x34   : > { %v322_v44 = vadd.f32 %v321_v39, %v320_v41  ;;  %v345_v39 = vsel %vm295_vm1, %v1210_v33, 0.0  ;;  %v1218_v41 = vld [vmem:[%s1090_s7 + $0xd0] sm:$0xff] }
  0x36   : > { %v324_v47 = vadd.f32 %v323_v42, %v322_v44  ;;  %v442_v44 = vmul.f32 %v1120_v25, %v1120_v25 }
  0x38   : > { %v326_v50 = vadd.f32 %v325_v45, %v324_v47  ;;  %v510_v45 = vsel %vm295_vm1, %v440_v29, 0.0  ;;  %v347_v47 = vsel %vm295_vm1, %v1218_v41, 0.0  ;;  %v514_v59 = vsel %vm295_vm1, %v442_v44, 0.0 }
  0x39   : > { %v511_v25 = vadd.f32 %v510_v45, %v509_v22  ;;  %v522_v29 = vsel %vm295_vm1, %v446_v3, 0.0  ;;  %v363_v45 = vsel %vm295_vm1, %v1289_v0, 0.0 }
  0x3a   : > { %v328_v53 = vadd.f32 %v327_v48, %v326_v50  ;;  %v1226_v48 = vld [vmem:[%s1090_s7 + $0xd8] sm:$0xff] }
  0x3c   : > { %v330_v57 = vadd.f32 %v329_v51, %v328_v53  ;;  %v443_v51 = vmul.f32 %v1125_v28, %v1125_v28  ;;  %v512_v53 = vsel %vm295_vm1, %v441_v36, 0.0  ;;  %v449_v36 = vmul.f32 %v1155_v46, %v1155_v46 }
  0x3d   : > { %v513_v28 = vadd.f32 %v512_v53, %v511_v25 }
  0x3e   : > { %v332_v62 = vadd.f32 %v331_v54, %v330_v57  ;;  %v349_v54 = vsel %vm295_vm1, %v1226_v48, 0.0  ;;  %v516_v5 = vsel %vm295_vm1, %v443_v51, 0.0  ;;  %v528_v51 = vsel %vm295_vm1, %v449_v36, 0.0 }
  0x3f   : > { %v515_v8 = vadd.f32 %v514_v59, %v513_v28  ;;  %v458_v36 = vmul.f32 %v1210_v33, %v1210_v33 }
  0x40   : > { %v334_v6 = vadd.f32 %v333_v60, %v332_v62  ;;  %v351_v60 = vsel %vm295_vm1, %v1234_v55, 0.0  ;;  %v1242_v62 = vld [vmem:[%s1090_s7 + $0xe8] sm:$0xff] }
  0x41   : > { %v517_v15 = vadd.f32 %v516_v5, %v515_v8 }
  0x42   : > { %v336_v12 = vadd.f32 %v335_v4, %v334_v6  ;;  %v445_v4 = vmul.f32 %v1135_v34, %v1135_v34  ;;  %v353_v6 = vsel %vm295_vm1, %v1242_v62, 0.0  ;;  %v637_v34 = vld [vmem:[%s1645_s1 + $0x8] sm:$0xff] }
  0x43   : > { %v856_v23 = vpack.c.bf16 %v637_v34, %v636_v11  ;;  %v1329_v11 = vld [vmem:[%s1090_s7 + $0x138] sm:$0xff] }
  0x44   : > { %v338_v20 = vadd.f32 %v337_v9, %v336_v12  ;;  %v518_v9 = vsel %vm295_vm1, %v444_v58, 0.0  ;;  %v1262_v12 = vld [vmem:[%s1090_s7 + $0xf8] sm:$0xff] }
  0x45   : > { %v357_v37 = vsel %vm295_vm1, %v1262_v12, 0.0  ;;  %v519_v21 = vadd.f32 %v518_v9, %v517_v15  ;;  %857 = vmatpush3.bf16.msra.mxu0 %v856_v23 }
  0x46   : > { %v340_v27 = vadd.f32 %v339_v17, %v338_v20  ;;  %v520_v20 = vsel %vm295_vm1, %v445_v4, 0.0 }
  0x48   : > { %v342_v35 = vadd.f32 %v341_v24, %v340_v27  ;;  %v1272_v24 = vld [vmem:[%s1090_s7 + $0x100] sm:$0xff]  ;;  %v448_v27 = vmul.f32 %v1150_v43, %v1150_v43  ;;  %v524_v43 = vsel %vm295_vm1, %v447_v10, 0.0 }
  0x49   : > { %v359_v40 = vsel %vm295_vm1, %v1272_v24, 0.0 }
  0x4a   : > { %v344_v42 = vadd.f32 %v343_v32, %v342_v35  ;;  %v521_v32 = vadd.f32 %v520_v20, %v519_v21  ;;  %v526_v44 = vsel %vm295_vm1, %v448_v27, 0.0  ;;  %v456_v20 = vmul.f32 %v1194_v18, %v1194_v18 }
  0x4c   : > { %v346_v50 = vadd.f32 %v345_v39, %v344_v42  ;;  %v523_v39 = vadd.f32 %v522_v29, %v521_v32  ;;  %v450_v42 = vmul.f32 %v1160_v49, %v1160_v49  ;;  %v457_v29 = vmul.f32 %v1202_v26, %v1202_v26  ;;  %v1353_v32 = vld [vmem:[%s1090_s7 + $0x150] sm:$0xff] }
  0x4e   : > { %v348_v57 = vadd.f32 %v347_v47, %v346_v50  ;;  %v525_v46 = vadd.f32 %v524_v43, %v523_v39  ;;  %v1297_v47 = vld [vmem:[%s1090_s7 + $0x118] sm:$0xff]  ;;  %v451_v50 = vmul.f32 %v1165_v52, %v1165_v52  ;;  %v530_v58 = vsel %vm295_vm1, %v450_v42, 0.0 }
  0x4f   : > { %v365_v53 = vsel %vm295_vm1, %v1297_v47, 0.0  ;;  %v542_v43 = vsel %vm295_vm1, %v456_v20, 0.0  ;;  %v1361_v39 = vld [vmem:[%s1090_s7 + $0x158] sm:$0xff]  ;;  %v459_v42 = vmul.f32 %v1218_v41, %v1218_v41  ;;  %v465_v20 = vmul.f32 %v1272_v24, %v1272_v24 }
  0x50   : > { %v350_v63 = vadd.f32 %v349_v54, %v348_v57  ;;  %v527_v49 = vadd.f32 %v526_v44, %v525_v46  ;;  %v1305_v54 = vld [vmem:[%s1090_s7 + $0x120] sm:$0xff]  ;;  %v452_v57 = vmul.f32 %v1170_v56, %v1170_v56  ;;  %v532_v4 = vsel %vm295_vm1, %v451_v50, 0.0 }
  0x51   : > { %v367_v59 = vsel %vm295_vm1, %v1305_v54, 0.0  ;;  %v544_v44 = vsel %vm295_vm1, %v457_v29, 0.0  ;;  %v1369_v46 = vld [vmem:[%s1090_s7 + $0x160] sm:$0xff]  ;;  %v460_v50 = vmul.f32 %v1226_v48, %v1226_v48  ;;  %v466_v29 = vmul.f32 %v1281_v16, %v1281_v16 }
  0x52   : > { %v352_v2 = vadd.f32 %v351_v60, %v350_v63  ;;  %v529_v52 = vadd.f32 %v528_v51, %v527_v49  ;;  %v1313_v60 = vld [vmem:[%s1090_s7 + $0x128] sm:$0xff]  ;;  %v453_v63 = vmul.f32 %v1175_v61, %v1175_v61  ;;  %v534_v3 = vsel %vm295_vm1, %v452_v57, 0.0 }
  0x53   : > { %v369_v5 = vsel %vm295_vm1, %v1313_v60, 0.0  ;;  %v546_v51 = vsel %vm295_vm1, %v458_v36, 0.0  ;;  %v1377_v49 = vld [vmem:[%s1090_s7 + $0x168] sm:$0xff]  ;;  %v461_v57 = vmul.f32 %v1234_v55, %v1234_v55  ;;  %v467_v36 = vmul.f32 %v1289_v0, %v1289_v0 }
  0x54   : > { %v354_v17 = vadd.f32 %v353_v6, %v352_v2  ;;  %v531_v56 = vadd.f32 %v530_v58, %v529_v52  ;;  %v1321_v6 = vld [vmem:[%s1090_s7 + $0x130] sm:$0xff]  ;;  %v454_v2 = vmul.f32 %v1181_v1, %v1181_v1  ;;  %v536_v15 = vsel %vm295_vm1, %v453_v63, 0.0 }
  0x55   : > { %v371_v9 = vsel %vm295_vm1, %v1321_v6, 0.0  ;;  %v548_v58 = vsel %vm295_vm1, %v459_v42, 0.0  ;;  %v1385_v52 = vld [vmem:[%s1090_s7 + $0x170] sm:$0xff]  ;;  %v462_v63 = vmul.f32 %v1242_v62, %v1242_v62  ;;  %v468_v42 = vmul.f32 %v1297_v47, %v1297_v47 }
  0x56   : > { %v356_v13 = vadd.f32 %v355_v14, %v354_v17  ;;  %v533_v61 = vadd.f32 %v532_v4, %v531_v56  ;;  %v455_v14 = vmul.f32 %v1188_v7, %v1188_v7  ;;  %v373_v17 = vsel %vm295_vm1, %v1329_v11, 0.0  ;;  %v1393_v56 = vld [vmem:[%s1090_s7 + $0x178] sm:$0xff] }
  0x57   : > { %v538_v21 = vsel %vm295_vm1, %v454_v2, 0.0  ;;  %v550_v4 = vsel %vm295_vm1, %v460_v50, 0.0  ;;  %v463_v2 = vmul.f32 %v1250_v31, %v1250_v31  ;;  %v469_v50 = vmul.f32 %v1305_v54, %v1305_v54 }
  0x58   : > { %v358_v35 = vadd.f32 %v357_v37, %v356_v13  ;;  %v535_v1 = vadd.f32 %v534_v3, %v533_v61  ;;  %v1337_v37 = vld [vmem:[%s1090_s7 + $0x140] sm:$0xff]  ;;  %v1345_v13 = vld [vmem:[%s1090_s7 + $0x148] sm:$0xff]  ;;  %v540_v30 = vsel %vm295_vm1, %v455_v14, 0.0  ;;  %v552_v3 = vsel %vm295_vm1, %v461_v57, 0.0 }
  0x59   : > { %v375_v23 = vsel %vm295_vm1, %v1337_v37, 0.0  ;;  %v1401_v61 = vld [vmem:[%s1090_s7 + $0x180] sm:$0xff]  ;;  %v464_v14 = vmul.f32 %v1262_v12, %v1262_v12  ;;  %v470_v57 = vmul.f32 %v1313_v60, %v1313_v60 }
  0x5a   : > { %v360_v19 = vadd.f32 %v359_v40, %v358_v35  ;;  %v537_v7 = vadd.f32 %v536_v15, %v535_v1  ;;  %v377_v40 = vsel %vm295_vm1, %v1345_v13, 0.0  ;;  %v554_v15 = vsel %vm295_vm1, %v462_v63, 0.0  ;;  %v1409_v1 = vld [vmem:[%s1090_s7 + $0x188] sm:$0xff] }
  0x5b   : > { %v471_v63 = vmul.f32 %v1321_v6, %v1321_v6 }
  0x5c   : > { %v362_v22 = vadd.f32 %v361_v38, %v360_v19  ;;  %v539_v18 = vadd.f32 %v538_v21, %v537_v7  ;;  %v379_v38 = vsel %vm295_vm1, %v1353_v32, 0.0  ;;  %v556_v21 = vsel %vm295_vm1, %v463_v2, 0.0  ;;  %v1417_v7 = vld [vmem:[%s1090_s7 + $0x190] sm:$0xff] }
  0x5d   : > { %v472_v2 = vmul.f32 %v1329_v11, %v1329_v11 }
  0x5e   : > { %v364_v25 = vadd.f32 %v363_v45, %v362_v22  ;;  %v541_v26 = vadd.f32 %v540_v30, %v539_v18  ;;  %v381_v45 = vsel %vm295_vm1, %v1361_v39, 0.0  ;;  %v558_v30 = vsel %vm295_vm1, %v464_v14, 0.0  ;;  %v1425_v18 = vld [vmem:[%s1090_s7 + $0x198] sm:$0xff] }
  0x5f   : > { %v473_v14 = vmul.f32 %v1337_v37, %v1337_v37 }
  0x60   : > { %v366_v28 = vadd.f32 %v365_v53, %v364_v25  ;;  %v543_v33 = vadd.f32 %v542_v43, %v541_v26  ;;  %v383_v53 = vsel %vm295_vm1, %v1369_v46, 0.0  ;;  %v560_v43 = vsel %vm295_vm1, %v465_v20, 0.0  ;;  %v1433_v26 = vld [vmem:[%s1090_s7 + $0x1a0] sm:$0xff] }
  0x61   : > { %v474_v20 = vmul.f32 %v1345_v13, %v1345_v13 }
  0x62   : > { %v368_v8 = vadd.f32 %v367_v59, %v366_v28  ;;  %v545_v41 = vadd.f32 %v544_v44, %v543_v33  ;;  %v385_v59 = vsel %vm295_vm1, %v1377_v49, 0.0  ;;  %v562_v44 = vsel %vm295_vm1, %v466_v29, 0.0  ;;  %v1441_v33 = vld [vmem:[%s1090_s7 + $0x1a8] sm:$0xff] }
  0x63   : > { %v475_v29 = vmul.f32 %v1353_v32, %v1353_v32 }
  0x64   : > { %v370_v34 = vadd.f32 %v369_v5, %v368_v8  ;;  %v547_v48 = vadd.f32 %v546_v51, %v545_v41  ;;  %v387_v5 = vsel %vm295_vm1, %v1385_v52, 0.0  ;;  %v564_v51 = vsel %vm295_vm1, %v467_v36, 0.0  ;;  %v1449_v41 = vld [vmem:[%s1090_s7 + $0x1b0] sm:$0xff] }
  0x65   : > { %v476_v36 = vmul.f32 %v1361_v39, %v1361_v39  ;;  %v1513_v39 = vld [vmem:[%s1090_s7 + $0x1f0] sm:$0xff] }
  0x66   : > { %v372_v10 = vadd.f32 %v371_v9, %v370_v34  ;;  %v549_v55 = vadd.f32 %v548_v58, %v547_v48  ;;  %v389_v9 = vsel %vm295_vm1, %v1393_v56, 0.0  ;;  %v566_v58 = vsel %vm295_vm1, %v468_v42, 0.0  ;;  %v1457_v48 = vld [vmem:[%s1090_s7 + $0x1b8] sm:$0xff] }
  0x67   : > { %v477_v42 = vmul.f32 %v1369_v46, %v1369_v46 }
  0x68   : > { %v374_v27 = vadd.f32 %v373_v17, %v372_v10  ;;  %v551_v62 = vadd.f32 %v550_v4, %v549_v55  ;;  %v391_v17 = vsel %vm295_vm1, %v1401_v61, 0.0  ;;  %v568_v4 = vsel %vm295_vm1, %v469_v50, 0.0  ;;  %v1465_v55 = vld [vmem:[%s1090_s7 + $0x1c0] sm:$0xff] }
  0x69   : > { %v478_v50 = vmul.f32 %v1377_v49, %v1377_v49  ;;  %v480_v49 = vmul.f32 %v1393_v56, %v1393_v56  ;;  %v483_v56 = vmul.f32 %v1417_v7, %v1417_v7 }
  0x6a   : > { %v376_v35 = vadd.f32 %v375_v23, %v374_v27  ;;  %v553_v31 = vadd.f32 %v552_v3, %v551_v62  ;;  %v393_v23 = vsel %vm295_vm1, %v1409_v1, 0.0  ;;  %v570_v3 = vsel %vm295_vm1, %v470_v57, 0.0  ;;  %v1473_v62 = vld [vmem:[%s1090_s7 + $0x1c8] sm:$0xff] }
  0x6b   : > { %v479_v57 = vmul.f32 %v1385_v52, %v1385_v52 }
  0x6c   : > { %v378_v19 = vadd.f32 %v377_v40, %v376_v35  ;;  %v555_v12 = vadd.f32 %v554_v15, %v553_v31  ;;  %v395_v40 = vsel %vm295_vm1, %v1417_v7, 0.0  ;;  %v572_v15 = vsel %vm295_vm1, %v471_v63, 0.0  ;;  %v1481_v31 = vld [vmem:[%s1090_s7 + $0x1d0] sm:$0xff] }
  0x6d   : > { %v586_v63 = vsel %vm295_vm1, %v478_v50, 0.0  ;;  %v486_v7 = vmul.f32 %v1441_v33, %v1441_v33 }
  0x6e   : > { %v380_v22 = vadd.f32 %v379_v38, %v378_v19  ;;  %v557_v24 = vadd.f32 %v556_v21, %v555_v12  ;;  %v397_v38 = vsel %vm295_vm1, %v1425_v18, 0.0  ;;  %v574_v21 = vsel %vm295_vm1, %v472_v2, 0.0  ;;  %v1489_v12 = vld [vmem:[%s1090_s7 + $0x1d8] sm:$0xff] }
  0x70   : > { %v382_v25 = vadd.f32 %v381_v45, %v380_v22  ;;  %v559_v16 = vadd.f32 %v558_v30, %v557_v24  ;;  %v399_v45 = vsel %vm295_vm1, %v1433_v26, 0.0  ;;  %v576_v30 = vsel %vm295_vm1, %v473_v14, 0.0  ;;  %v1497_v24 = vld [vmem:[%s1090_s7 + $0x1e0] sm:$0xff] }
  0x72   : > { %v384_v28 = vadd.f32 %v383_v53, %v382_v25  ;;  %v561_v0 = vadd.f32 %v560_v43, %v559_v16  ;;  %v401_v53 = vsel %vm295_vm1, %v1441_v33, 0.0  ;;  %v578_v43 = vsel %vm295_vm1, %v474_v20, 0.0  ;;  %v1505_v16 = vld [vmem:[%s1090_s7 + $0x1e8] sm:$0xff] }
  0x73   : > { %v489_v33 = vmul.f32 %v1465_v55, %v1465_v55 }
  0x74   : > { %v386_v8 = vadd.f32 %v385_v59, %v384_v28  ;;  %v563_v47 = vadd.f32 %v562_v44, %v561_v0  ;;  %v403_v59 = vsel %vm295_vm1, %v1449_v41, 0.0  ;;  %v580_v44 = vsel %vm295_vm1, %v475_v29, 0.0  ;;  %v294_v29 = vld [vmem:[#allocation2] sm:$0x1] }
  0x76   : > { %v388_v34 = vadd.f32 %v387_v5, %v386_v8  ;;  %v565_v54 = vadd.f32 %v564_v51, %v563_v47  ;;  %v405_v5 = vsel %vm295_vm1, %v1457_v48, 0.0  ;;  %v582_v51 = vsel %vm295_vm1, %v476_v36, 0.0 }
  0x77   : > { %v488_v36 = vmul.f32 %v1457_v48, %v1457_v48  ;;  %v491_v48 = vmul.f32 %v1481_v31, %v1481_v31 }
  0x78   : > { %v390_v10 = vadd.f32 %v389_v9, %v388_v34  ;;  %v567_v60 = vadd.f32 %v566_v58, %v565_v54  ;;  %v407_v9 = vsel %vm295_vm1, %v1465_v55, 0.0  ;;  %v584_v58 = vsel %vm295_vm1, %v477_v42, 0.0 }
  0x79   : > { %v606_v42 = vsel %vm295_vm1, %v488_v36, 0.0 }
  0x7a   : > { %v392_v27 = vadd.f32 %v391_v17, %v390_v10  ;;  %v569_v6 = vadd.f32 %v568_v4, %v567_v60  ;;  %v409_v17 = vsel %vm295_vm1, %v1473_v62, 0.0  ;;  %v481_v60 = vmul.f32 %v1401_v61, %v1401_v61 }
  0x7b   : > { %v484_v61 = vmul.f32 %v1425_v18, %v1425_v18  ;;  %v487_v18 = vmul.f32 %v1449_v41, %v1449_v41  ;;  %v490_v41 = vmul.f32 %v1473_v62, %v1473_v62  ;;  %v612_v62 = vsel %vm295_vm1, %v491_v48, 0.0 }
  0x7c   : > { %v394_v35 = vadd.f32 %v393_v23, %v392_v27  ;;  %v571_v11 = vadd.f32 %v570_v3, %v569_v6  ;;  %v411_v23 = vsel %vm295_vm1, %v1481_v31, 0.0  ;;  %v482_v3 = vmul.f32 %v1409_v1, %v1409_v1 }
  0x7d   : > { %v592_v14 = vsel %vm295_vm1, %v481_v60, 0.0  ;;  %v485_v1 = vmul.f32 %v1433_v26, %v1433_v26  ;;  %v610_v55 = vsel %vm295_vm1, %v490_v41, 0.0 }
  0x7e   : > { %v396_v19 = vadd.f32 %v395_v40, %v394_v35  ;;  %v573_v37 = vadd.f32 %v572_v15, %v571_v11  ;;  %v413_v40 = vsel %vm295_vm1, %v1489_v12, 0.0  ;;  %v594_v11 = vsel %vm295_vm1, %v482_v3, 0.0 }
  0x80   : > { %v398_v22 = vadd.f32 %v397_v38, %v396_v19  ;;  %v575_v13 = vadd.f32 %v574_v21, %v573_v37  ;;  %v415_v38 = vsel %vm295_vm1, %v1497_v24, 0.0  ;;  %v596_v21 = vsel %vm295_vm1, %v483_v56, 0.0 }
  0x82   : > { %v400_v25 = vadd.f32 %v399_v45, %v398_v22  ;;  %v577_v32 = vadd.f32 %v576_v30, %v575_v13  ;;  %v417_v45 = vsel %vm295_vm1, %v1505_v16, 0.0  ;;  %v600_v13 = vsel %vm295_vm1, %v485_v1, 0.0 }
  0x83   : > { %v725_v1 = vlaneseq }
  0x84   : > { %v402_v28 = vadd.f32 %v401_v53, %v400_v25  ;;  %v579_v0 = vadd.f32 %v578_v43, %v577_v32  ;;  %v419_v53 = vsel %vm295_vm1, %v1513_v39, 0.0  ;;  %v1521_v25 = vld [vmem:[%s1090_s7 + $0x1f8] sm:$0xff]  ;;  %v602_v43 = vsel %vm295_vm1, %v486_v7, 0.0  ;;  %s1596_s7 = scalar_lea.hbm %s1648_s4, %s841_s26 }
  0x85   : > { %v604_v32 = vsel %vm295_vm1, %v487_v18, 0.0 }
  0x86   : > { %v404_v8 = vadd.f32 %v403_v59, %v402_v28  ;;  %v581_v47 = vadd.f32 %v580_v44, %v579_v0  ;;  %v421_v59 = vsel %vm295_vm1, %v1521_v25, 0.0 }
  0x88   : > { %v406_v34 = vadd.f32 %v405_v5, %v404_v8  ;;  %v583_v54 = vadd.f32 %v582_v51, %v581_v47  ;;  %v588_v8 = vsel %vm295_vm1, %v479_v57, 0.0  ;;  %v493_v51 = vmul.f32 %v1497_v24, %v1497_v24 }
  0x89   : > { %v494_v47 = vmul.f32 %v1505_v16, %v1505_v16  ;;  %v495_v57 = vmul.f32 %v1513_v39, %v1513_v39 }
  0x8a   : > { %v408_v10 = vadd.f32 %v407_v9, %v406_v34  ;;  %v585_v4 = vadd.f32 %v584_v58, %v583_v54  ;;  %v590_v9 = vsel %vm295_vm1, %v480_v49, 0.0 }
  0x8b   : > { %v618_v24 = vsel %vm295_vm1, %v494_v47, 0.0 }
  0x8c   : > { %v410_v27 = vadd.f32 %v409_v17, %v408_v10  ;;  %v587_v52 = vadd.f32 %v586_v63, %v585_v4 }
  0x8e   : > { %v412_v35 = vadd.f32 %v411_v23, %v410_v27  ;;  %v589_v6 = vadd.f32 %v588_v8, %v587_v52  ;;  %v598_v27 = vsel %vm295_vm1, %v484_v61, 0.0 }
  0x90   : > { %v414_v19 = vadd.f32 %v413_v40, %v412_v35  ;;  %v591_v15 = vadd.f32 %v590_v9, %v589_v6 }
  0x92   : > { %v416_v22 = vadd.f32 %v415_v38, %v414_v19  ;;  %v593_v10 = vadd.f32 %v592_v14, %v591_v15 }
  0x94   : > { %v418_v46 = vadd.f32 %v417_v45, %v416_v22  ;;  %v595_v23 = vadd.f32 %v594_v11, %v593_v10  ;;  %v608_v45 = vsel %vm295_vm1, %v489_v33, 0.0  ;;  %v492_v22 = vmul.f32 %v1489_v12, %v1489_v12 }
  0x95   : > { %v616_v12 = vsel %vm295_vm1, %v493_v51, 0.0  ;;  %v1002_v10 = vmov 1966171168  }
  0x96   : > { %v420_v28 = vadd.f32 %v419_v53, %v418_v46  ;;  %v597_v30 = vadd.f32 %v596_v21, %v595_v23  ;;  %v614_v31 = vsel %vm295_vm1, %v492_v22, 0.0  ;;  %v726_v23 = vshrl.u32 %v725_v1, 7 }
  0x98   : > { %v422_v5 = vadd.f32 %v421_v59, %v420_v28  ;;  %v599_v35 = vadd.f32 %v598_v27, %v597_v30  ;;  %v496_v59 = vmul.f32 %v1521_v25, %v1521_v25  ;;  %v620_v28 = vsel %vm295_vm1, %v495_v57, 0.0  ;;  %v720_v30 = vld [vmem:[%s1646_s2] sm:$0x1] }
  0x9a   : > { %v423_v2 = vrot.slane %v422_v5, 4  ;;  %v601_v38 = vadd.f32 %v600_v13, %v599_v35  ;;  %v622_v16 = vsel %vm295_vm1, %v496_v59, 0.0  ;;  %v739_v13 = vld [vmem:[%s1647_s3] sm:$0x1] }
  0x9c   : > { %v424_v34 = vadd.f32 %v423_v2, %v422_v5  ;;  %v603_v19 = vadd.f32 %v602_v43, %v601_v38  ;;  %v432_v2 = vld [vmem:[#allocation2 + $0x1] sm:$0x1] }
  0x9e   : > { %v425_v17 = vrot.slane %v424_v34, 2  ;;  %v605_v44 = vadd.f32 %v604_v32, %v603_v19 }
  0xa0   : > { %v426_v20 = vadd.f32 %v425_v17, %v424_v34  ;;  %v607_v0 = vadd.f32 %v606_v42, %v605_v44 }
  0xa2   : > { %v427_v37 = vrot.slane %v426_v20, 1  ;;  %v609_v50 = vadd.f32 %v608_v45, %v607_v0 }
  0xa4   : > { %v428_v40 = vadd.f32 %v427_v37, %v426_v20  ;;  %v611_v53 = vadd.f32 %v610_v55, %v609_v50  ;;  %v723_v20 = vunpack.c.l.s4 %v1002_v10 }
  0xa6   : > { %v429_v26 = vadd.f32 %v428_v40, %v294_v29  ;;  %v613_v46 = vadd.f32 %v612_v62, %v611_v53  ;;  %v724_v21 = vunpack.c.0.s8 %v723_v20 }
  0xa8   : > { %431 = vst.msk [vmem:[#allocation2] sm:$0x1] %vm430_vm3, %v429_v26  ;;  %v615_v58 = vadd.f32 %v614_v31, %v613_v46  ;;  %v727_v37 = vsub.s32 %v724_v21, %v726_v23 }
  0xaa   : > { %v617_v54 = vadd.f32 %v616_v12, %v615_v58 }
  0xac   : > { %v619_v49 = vadd.f32 %v618_v24, %v617_v54 }
  0xae   : > { %v621_v63 = vadd.f32 %v620_v28, %v619_v49 }
  0xb0   : > { %v623_v4 = vadd.f32 %v622_v16, %v621_v63 }
  0xb2   : > { %v624_v5 = vrot.slane %v623_v4, 4 }
  0xb4   : > { %v625_v60 = vadd.f32 %v624_v5, %v623_v4 }
  0xb6   : > { %v626_v8 = vrot.slane %v625_v60, 2 }
  0xb8   : > { %v627_v39 = vadd.f32 %v626_v8, %v625_v60 }
  0xba   : > { %v628_v52 = vrot.slane %v627_v39, 1 }
  0xbc   : > { %v629_v3 = vadd.f32 %v628_v52, %v627_v39 }
  0xbe   : > { %v630_v9 = vadd.f32 %v629_v3, %v432_v2 }
  0xc0   : > { %631 = vst.msk [vmem:[#allocation2 + $0x1] sm:$0x1] %vm430_vm3, %v630_v9 }
  0xc7   : > { %v635_v25 = vld [vmem:[#allocation2] sm:$0x3] }
  0xc8   : > { %853 = vmatmul.mubr.msk.f32.vlgmr.msra.gmra.mrb[0].mxu0 %vm295_vm1, %v635_v25 }
 0x19b   : > { %v707_v6 = vpop.f32.mrb[0].mxu0 }
 0x19c   : > { %v854_v34 = vpop.f32.mrb[1].mxu0  ;;  %v711_v56 = vmul.f32 0.0009765625, %v707_v6 }
 0x19e   : > { %v712_v14 = vmul.f32 %v711_v56, %v711_v56 }
 0x1a0   : > { %v714_v15 = vrot.slane %v712_v14, 7 }
 0x1a2   : > { %v716_v17 = vsub.f32 %v711_v56, %v714_v15 }
 0x1a4   : > { %v717_v61 = vmax.f32 %v716_v17, 0.0 }
 0x1a6   : > { %v718_v11 = vadd.f32 1e-05, %v717_v61 }
 0x1a8   : > { %917 = vrsqrt.f32 %v718_v11 }
 0x1b2   : > { %v918_v7 = vpop.eup %917 }
 0x1b3   : > { %v728_v27 = vrot.slane %v918_v7, %v727_v37 }
 0x1b5   : > { %v729_v29 = vcombine.high %v728_v27, %v728_v27 }
 0x1b7   : > { %v736_v40 = vrot.slane %v729_v29, %v727_v37 }
 0x1b9   : > { %v738_v18 = vmul.f32 %v736_v40, %v720_v30 }
 0x1bb   : > { %v740_v35 = vmul.f32 %v738_v18, %v711_v56  ;;  %742 = vst.msk [vmem:[%s213_s29] sm:$0x1] %vm430_vm3, %v738_v18 }
 0x1bd   : > { %v741_v26 = vsub.f32 %v739_v13, %v740_v35 }
 0x1bf   : > { %743 = vst.msk [vmem:[%s213_s29 + $0x1] sm:$0x1] %vm430_vm3, %v741_v26 }
 0x1c0   : > { %932 = shalt.err (!%p929_p5)
}
 0x1c1   : > { %s933_s12 = scalar_lea.hbm %s1596_s7, 32  ;;  %s937_s21 = scalar_lea.hbm %s1648_s4, 64 }
 0x1c2   : > { %p934_p6 = scmp.ne.s32.totalorder %s1596_s7, %s933_s12  ;;  %p938_p10 = scmp.lt.u32.totalorder %s1596_s7, %s1648_s4 }
 0x1c3   : > { %p939_p11 = scmp.lt.u32.totalorder %s937_s21, %s933_s12  ;;  %p941_p13 = scmp.lt.u32.totalorder %s933_s12, %s1596_s7 }
 0x1c4   : > { %p935_p7 = pnand %p934_p6, %p1069_p4 }
 0x1c5   : > { %p940_p12 = por %p939_p11, %p938_p10 }
 0x1c6   : > { %p936_p9 = pneg %p935_p7 }
 0x1c7   : > { %p942_p0 = por %p941_p13, %p940_p12 }
 0x1c9   : > { %p943_p1 = pnand %p942_p0, %p936_p9 }
 0x1cb   : > { %946 = shalt.err (!%p943_p1)
}
 0x1cc   : > { %858 = dma.vmem_to_hbm [thread:$0]  (%p1069_p4), %s1598_s30, 32, %s1596_s7, %s745_s8  }
 0x1cd PF: > { %p864_p2 = scmp.ge.s32.totalorder %s997_s20, 2  ;;  %s770_s26 = sand.u32 1, %s977_s15  }
 0x1ce   : > { %s771_s29 = scalar_lea.sflag [#allocation4], %s770_s26 }
 0x1cf   : > { %p861_p3 = pnand %p864_p2, %p1076_p8 }
 0x1d1   : > { %972 = dma.done.wait (!%p861_p3), %s771_s29, 32  }
 0x1d2   : > { %974 = vsyncadd (!%p861_p3), %s771_s29, 4294967264  ;;  %s17_s20 = sadd.s32 1, %s997_s20   ;;  %s1651_s15 = smov %s981_s16 }
 0x1d3   : > { %p14_p5 = scmp.ge.s32.totalorder %s17_s20, 4   ;;  %s1652_s16 = smov %s985_s17 }
 0x1d4   : > { %s1653_s17 = smov %s1082_s28  ;;  %s1654_s18 = smov %s993_s19 }
 0x1d5   : > { %s1655_s19 = smov %s1657_s23  ;;  %16 = sbr.rel (!%p14_p5) target bundleno = 4 (0x4), region = 79 }
 0x1dc   :  { %776 = vsyncpa [#allocation4], 1 }
 0x1dd   :  { %778 = vsyncpa [#allocation4 + $0x1], 1 }

</bundles_post_ra>
